<compile_context>
chip_gen: v5e
topology: v5e:2x2
jax: 0.10.0
libtpu: 0.0.40
codegen_flags: <defaults>
</compile_context>

<pallas_src>
import math
import functools

import numpy as np
import jax
import jax.numpy as jnp
from jax import lax
from jax.experimental import pallas as pl
from jax.experimental.pallas import tpu as pltpu


def _round_up(x, m):
    return -(-x // m) * m


_VMEM_LIMIT = 32 * 1024 * 1024  # explicit, safe on v5e/v6e/v7x (review item 4)


# ---------------------------------------------------------------------------
# Kernel 1: ray march -> packed key of first occupied voxel hit, per pixel.
# grid = (pixel tiles [parallel], voxel-key chunks [arbitrary/reduction]).
# ---------------------------------------------------------------------------
def _ray_march_kernel(kparams_ref, ray_ref, vkey_ref, hitkey_ref, step_ref, *,
                      num_steps, depth_min, ray_inc, tile_p, tile_v):
    """kparams_ref : SMEM (8,) int32  [DX, DY, DZ, bstride, sx, sy, 0, 0]
    ray_ref     : (8, TP)   f32    rows: ox, oy, oz, dx, dy, dz, batch, pad
    vkey_ref    : (TNV, 1)  int32  packed voxel keys for this chunk
    hitkey_ref  : (1, TP)   int32  first-hit packed key (-1 = none), resident across chunks
    step_ref    : (1, TP)   int32  VMEM scratch: step index of the first hit
    """
    @pl.when(pl.program_id(1) == 0)
    def _init():
        hitkey_ref[...] = jnp.full((1, tile_p), -1, jnp.int32)
        step_ref[...] = jnp.full((1, tile_p), num_steps, jnp.int32)

    ray = ray_ref[...]
    ox, oy, oz = ray[0:1, :], ray[1:2, :], ray[2:3, :]
    dx, dy, dz = ray[3:4, :], ray[4:5, :], ray[5:6, :]
    bidx = ray[6:7, :].astype(jnp.int32)                      # (1, TP)

    # grid extents / packing strides (scalars from SMEM, hoisted out of the loop)
    dxm = kparams_ref[0].astype(jnp.float32)                  # clip upper bound x
    dym = kparams_ref[1].astype(jnp.float32)
    dzm = kparams_ref[2].astype(jnp.float32)
    bstride = kparams_ref[3]
    sx = kparams_ref[4]
    sy = kparams_ref[5]
    # key = b*bstride + (cx+1)*sx + (cy+1)*sy + (cz+1); fold the +1 offsets here.
    bbase = bidx * bstride + (sx + sy + 1)                    # (1, TP) int32

    # Voxel chunk: loaded + lane-broadcast once per grid step (loop-invariant),
    # instead of once per depth step (review: hoist vkey load/broadcast).
    vk = jnp.broadcast_to(vkey_ref[...], (tile_v, tile_p))    # (TNV, TP) int32

    def step(s, carry):
        best_step, best_key = carry
        t = depth_min + s.astype(jnp.float32) * ray_inc
        cx = jnp.clip(jnp.floor(ox + t * dx), -1.0, dxm).astype(jnp.int32)
        cy = jnp.clip(jnp.floor(oy + t * dy), -1.0, dym).astype(jnp.int32)
        cz = jnp.clip(jnp.floor(oz + t * dz), -1.0, dzm).astype(jnp.int32)
        key_s = bbase + cx * sx + cy * sy + cz                # (1, TP) int32
        # Occupancy test stays integer (no float casts, review item 1).
        occ = jnp.max((vk == key_s).astype(jnp.int32), axis=0, keepdims=True)
        upd = (occ > 0) & (s < best_step)                     # strictly earlier hit only
        best_step = jnp.where(upd, s, best_step)
        best_key = jnp.where(upd, key_s, best_key)
        return best_step, best_key

    bs, bk = lax.fori_loop(0, num_steps, step, (step_ref[...], hitkey_ref[...]))
    step_ref[...] = bs
    hitkey_ref[...] = bk


# ---------------------------------------------------------------------------
# Kernel 2: build the one-hot assignment matrix and scatter features via the MXU.
# grid = (voxel tiles [parallel], pixel tiles [arbitrary/reduction]).
# ---------------------------------------------------------------------------
def _scatter_kernel(pmap_ref, nact_ref, vkey_ref, hitkey_ref, feat_ref,
                    out_ref, cnt_ref):
    """pmap_ref   : SMEM (n_ptiles,) int32  remap: active pixel tiles first
    nact_ref   : SMEM (1,)        int32  number of active pixel tiles
    vkey_ref   : (TN, 1)    int32  packed voxel keys for this voxel tile
    hitkey_ref : (1, TP2)   int32  per-pixel first-hit keys
    feat_ref   : (TP2, Cpad) bf16  per-pixel features
    out_ref    : (TN, Cpad) f32    feature-sum accumulator (resident across pixel axis)
    cnt_ref    : (TN, 1)    f32    hit-count accumulator  (resident across pixel axis)
    """
    del pmap_ref  # only used inside the index_maps

    @pl.when(pl.program_id(1) == 0)
    def _init():
        out_ref[...] = jnp.zeros_like(out_ref)
        cnt_ref[...] = jnp.zeros_like(cnt_ref)

    # Skip pixel tiles without any hit (grid was remapped so active tiles come first).
    @pl.when(pl.program_id(1) < nact_ref[0])
    def _accumulate():
        m = vkey_ref[...] == hitkey_ref[...]                  # (TN, TP2) bool
        # single select pass bool -> bf16 (no f32 intermediate, review item 2)
        m_bf = jnp.where(m, jnp.bfloat16(1.0), jnp.bfloat16(0.0))
        out_ref[...] += jnp.dot(m_bf, feat_ref[...],
                                preferred_element_type=jnp.float32)
        # counts via row-sum of M (no appended ones column -> Cpad = round_up(C,128))
        cnt_ref[...] += jnp.sum(m, axis=1, keepdims=True, dtype=jnp.float32)


class Project2DFeaturesTPU:
    def __init__(self, width, height, voxel_size, config=None,
                 depth_min=0.1, depth_max=4.0,
                 tile_p=512, tile_p2=2048, tile_n=2048, tile_nv=512):
        self.image_width = width
        self.image_height = height
        self.voxel_size = voxel_size
        self.ray_increment = voxel_size / 2.0
        self.config = config
        self.depth_min = depth_min / voxel_size
        self.depth_max = depth_max / voxel_size
        # TODO(synk): the CUDA kernel receives ray_increment in metric units while the
        # depth bounds are in voxel units; we march in voxel-grid units with a step of
        # ray_increment/voxel_size (= 0.5 voxel). Exact internal convention (and DDA vs
        # point sampling) of the closed-source CUDA kernel unknown.
        self._step_vox = self.ray_increment / voxel_size
        self.tile_p = tile_p        # kernel-1 pixel tile
        self.tile_p2 = tile_p2      # kernel-2 pixel (contraction) tile
        self.tile_n = tile_n        # kernel-2 voxel tile
        self.tile_nv = tile_nv      # kernel-1 voxel-key chunk

    def num_steps(self):
        return max(1, int(math.floor((self.depth_max - self.depth_min)
                                     / self._step_vox + 1e-6)) + 1)

    @staticmethod
    def make_rays(local_views, intrinsic_params, B, V, H, W):
        # TODO(synk): rays could be generated in-kernel from SMEM camera params
        # (idle EUP handles the rsqrt) to save the (8, P) HBM read + this XLA pass.
        u = jnp.arange(W, dtype=jnp.float32) + 0.5
        v = jnp.arange(H, dtype=jnp.float32) + 0.5
        uu = jnp.broadcast_to(u[None, None, None, :], (B, V, H, W))
        vv = jnp.broadcast_to(v[None, None, :, None], (B, V, H, W))
        fx = intrinsic_params[..., 0][..., None, None]
        fy = intrinsic_params[..., 1][..., None, None]
        cx = intrinsic_params[..., 2][..., None, None]
        cy = intrinsic_params[..., 3][..., None, None]
        dir_cam = jnp.stack([(uu - cx) / fx, (vv - cy) / fy, jnp.ones_like(uu)],
                            axis=-1)
        R = local_views[:, :, :3, :3]
        tvec = local_views[:, :, :3, 3]
        dir_w = jnp.einsum('bvij,bvhwj->bvhwi', R, dir_cam)
        dir_w = dir_w / (jnp.linalg.norm(dir_w, axis=-1, keepdims=True) + 1e-8)
        org_w = jnp.broadcast_to(tvec[:, :, None, None, :], (B, V, H, W, 3))
        bid = jnp.broadcast_to(
            jnp.arange(B, dtype=jnp.float32)[:, None, None, None], (B, V, H, W))
        return org_w, dir_w, bid

    def __call__(self, encoded_2d_features, coords, view_matrix, intrinsic_params):
        # TODO(synk): pred_mode=True (label projection / ignore_label fill) path not implemented.
        coords = jnp.asarray(coords, jnp.int32)
        feats_in = jnp.asarray(encoded_2d_features, jnp.float32)
        view_matrix = jnp.asarray(view_matrix, jnp.float32)
        intrinsic_params = jnp.asarray(intrinsic_params, jnp.float32)

        B, V, H, W, C = feats_in.shape
        N = coords.shape[0]

        # ---- per-batch shift of coords & camera translation (no host sync) ----
        seg = coords[:, 0]
        shifts = jax.ops.segment_min(coords[:, 1:], seg, num_segments=B)       # (B, 3)
        local_coords = coords.at[:, 1:].add(-shifts[seg])
        local_views = view_matrix.at[:, :, :3, 3].add(
            -shifts[:, None, :].astype(view_matrix.dtype))

        # ---- packed voxel keys + grid-dim packing params ----
        dims = jnp.max(local_coords[:, 1:], axis=0).astype(jnp.int32) + 1      # (3,)
        sy_s = dims[2] + 2
        sx_s = (dims[1] + 2) * sy_s
        bstride_s = (dims[0] + 2) * sx_s
        # TODO(synk): assumes B*prod(dims+2) < 2^31; larger scenes would alias keys.
        vkey = (local_coords[:, 0] * bstride_s
                + (local_coords[:, 1] + 1) * sx_s
                + (local_coords[:, 2] + 1) * sy_s
                + (local_coords[:, 3] + 1)).astype(jnp.int32)
        zero = jnp.zeros((), jnp.int32)
        kparams = jnp.stack([dims[0], dims[1], dims[2],
                             bstride_s, sx_s, sy_s, zero, zero]).astype(jnp.int32)

        # ---- camera ray setup (XLA glue) ----
        org_w, dir_w, bid = self.make_rays(local_views, intrinsic_params, B, V, H, W)

        # ---- tile selection (v7x-safe VMEM budget) ----
        P = B * V * H * W
        TP = self.tile_p
        TP2 = self.tile_p2
        while TP2 > TP and P <= TP2 // 2:
            TP2 //= 2
        TN = self.tile_n
        while TN > 8 and max(N, 1) <= TN // 2:
            TN //= 2
        TNV = self.tile_nv
        while TNV > 8 and max(N, 1) <= TNV // 2:
            TNV //= 2
        Cpad = max(128, _round_up(C, 128))

        def _k2_vmem(tn, tp2):
            return (2 * tp2 * Cpad * 2          # feats blocks (bf16, double buffered)
                    + 2 * tn * Cpad * 4         # out accumulator
                    + 4 * tn * 128 * 4          # cnt + vkey blocks (lane padded)
                    + 2 * 8 * tp2 * 4)          # hitkey blocks
        while _k2_vmem(TN, TP2) > 24 * 2 ** 20 and TP2 > TP:
            TP2 //= 2
        while _k2_vmem(TN, TP2) > 24 * 2 ** 20 and TN > 512:
            TN //= 2

        P_pad = _round_up(P, TP2)
        N_pad = _round_up(max(N, 1), math.lcm(TN, TNV))
        n_ptiles = P_pad // TP2

        # ---- pack kernel-1 inputs ----
        ray = jnp.concatenate([
            org_w.reshape(P, 3).T,                  # rows 0..2: origin (voxel units)
            dir_w.reshape(P, 3).T,                  # rows 3..5: direction
            bid.reshape(1, P),                      # row 6: batch id
            jnp.zeros((1, P), jnp.float32),         # row 7: pad
        ], axis=0)                                  # (8, P)
        ray = jnp.pad(ray, ((0, 0), (0, P_pad - P)))
        if P_pad > P:
            ray = ray.at[6, P:].set(-1.0)           # padded pixels -> negative keys, never match

        vkey_col = jnp.full((N_pad, 1), jnp.iinfo(jnp.int32).min + 1, dtype=jnp.int32)
        vkey_col = vkey_col.at[:N, 0].set(vkey)     # pad rows never match a hit key

        num_steps = self.num_steps()

        # ---- kernel 1: ray march -> per-pixel first-hit packed keys ----
        march_kernel = functools.partial(
            _ray_march_kernel, num_steps=num_steps,
            depth_min=float(self.depth_min), ray_inc=float(self._step_vox),
            tile_p=TP, tile_v=TNV)

        hit_key = pl.pallas_call(
            march_kernel,
            grid_spec=pltpu.PrefetchScalarGridSpec(
                num_scalar_prefetch=1,
                grid=(P_pad // TP, N_pad // TNV),
                in_specs=[
                    pl.BlockSpec((8, TP), lambda p, v, kp: (0, p)),     # rays
                    pl.BlockSpec((TNV, 1), lambda p, v, kp: (v, 0)),    # voxel keys (chunked)
                ],
                out_specs=pl.BlockSpec((1, TP), lambda p, v, kp: (0, p)),
                scratch_shapes=[pltpu.VMEM((1, TP), jnp.int32)],        # first-hit step
            ),
            out_shape=jax.ShapeDtypeStruct((1, P_pad), jnp.int32),
            compiler_params=pltpu.CompilerParams(
                dimension_semantics=("parallel", "arbitrary"),
                vmem_limit_bytes=_VMEM_LIMIT),
        )(kparams, ray, vkey_col)

        # ---- active pixel tiles (skip all-miss tiles in kernel 2) ----
        hk_tiles = hit_key.reshape(n_ptiles, TP2)
        active = jnp.any(hk_tiles >= 0, axis=1)
        pmap = jnp.nonzero(active, size=n_ptiles, fill_value=0)[0].astype(jnp.int32)
        nact = jnp.sum(active).astype(jnp.int32).reshape(1)

        # ---- kernel-2 feature matrix (bf16, lane-dense) ----
        # TODO(synk): features quantized to bf16 before MXU accumulation (f32 acc);
        # the CUDA reference accumulates the original f32 values.
        feats = jnp.zeros((P_pad, Cpad), jnp.bfloat16)
        feats = feats.at[:P, :C].set(feats_in.reshape(P, C).astype(jnp.bfloat16))

        # ---- kernel 2: scatter/average features into voxels via MXU ----
        out_sum, out_cnt = pl.pallas_call(
            _scatter_kernel,
            grid_spec=pltpu.PrefetchScalarGridSpec(
                num_scalar_prefetch=2,
                grid=(N_pad // TN, n_ptiles),
                in_specs=[
                    pl.BlockSpec((TN, 1), lambda n, p, pm, na: (n, 0)),
                    pl.BlockSpec((1, TP2), lambda n, p, pm, na: (0, pm[p])),
                    pl.BlockSpec((TP2, Cpad), lambda n, p, pm, na: (pm[p], 0)),
                ],
                out_specs=[
                    pl.BlockSpec((TN, Cpad), lambda n, p, pm, na: (n, 0)),
                    pl.BlockSpec((TN, 1), lambda n, p, pm, na: (n, 0)),
                ],
            ),
            out_shape=(jax.ShapeDtypeStruct((N_pad, Cpad), jnp.float32),
                       jax.ShapeDtypeStruct((N_pad, 1), jnp.float32)),
            compiler_params=pltpu.CompilerParams(
                dimension_semantics=("parallel", "arbitrary"),
                vmem_limit_bytes=_VMEM_LIMIT),
        )(pmap, nact, vkey_col, hit_key, feats)

        cnt = out_cnt[:N, 0]                                   # exact integer-valued f32
        mapping2dto3d_num = cnt.astype(jnp.int32)
        projected_features = out_sum[:N, :C] / (cnt[:, None] + 0.0001)
        return projected_features, mapping2dto3d_num


# ---------------------------------------------------------------------------
# Pure numpy reference of the same marching/scatter algorithm (test only).
# ---------------------------------------------------------------------------
def _reference_project(org_w, dir_w, coords_np, feats_np, depth_min, step, num_steps):
    B, V, H, W, C = feats_np.shape
    P = B * V * H * W
    N = coords_np.shape[0]
    local = coords_np.copy()
    for b in range(B):
        msk = coords_np[:, 0] == b
        local[msk, 1:] -= coords_np[msk, 1:].min(axis=0)
    dims = local[:, 1:].max(axis=0) + 1
    grid = -np.ones((B, dims[0] + 2, dims[1] + 2, dims[2] + 2), np.int64)
    grid[local[:, 0], local[:, 1] + 1, local[:, 2] + 1, local[:, 3] + 1] = np.arange(N)

    org = np.asarray(org_w, np.float32).reshape(P, 3)
    dirn = np.asarray(dir_w, np.float32).reshape(P, 3)
    bidn = np.repeat(np.arange(B), V * H * W)
    dims_f = dims.astype(np.float32)
    hit = np.full(P, -1, np.int64)
    for s in range(num_steps):
        t = np.float32(depth_min) + np.float32(s) * np.float32(step)
        pos = org + t * dirn
        cc = np.clip(np.floor(pos), -1.0, dims_f[None, :]).astype(np.int64)
        idx = grid[bidn, cc[:, 0] + 1, cc[:, 1] + 1, cc[:, 2] + 1]
        upd = (hit < 0) & (idx >= 0)
        hit[upd] = idx[upd]

    fl = np.asarray(feats_np, np.float64).reshape(P, C)
    acc = np.zeros((N, C), np.float64)
    sel = hit >= 0
    np.add.at(acc, hit[sel], fl[sel])
    cnt = np.bincount(hit[sel], minlength=N).astype(np.int64)
    proj = acc / (cnt[:, None] + 1e-4)
    return proj, cnt


if __name__ == "__main__":
    key = jax.random.PRNGKey(0)
    B, V, H, W, C = 2, 1, 16, 16, 32
    voxel_size = 1.0

    k_feat, k_perm0, k_perm1 = jax.random.split(key, 3)
    encoded_2d_features = jax.random.normal(k_feat, (B, V, H, W, C), dtype=jnp.float32)

    # cameras: identity rotation, positioned off-grid, looking along +z
    view_matrix = jnp.tile(jnp.eye(4, dtype=jnp.float32)[None, None], (B, V, 1, 1))
    view_matrix = view_matrix.at[:, :, 0, 3].set(4.3)
    view_matrix = view_matrix.at[:, :, 1, 3].set(3.7)
    view_matrix = view_matrix.at[:, :, 2, 3].set(0.2)
    intrinsic_params = jnp.tile(
        jnp.array([16.0, 16.0, 8.0, 8.0], dtype=jnp.float32)[None, None], (B, V, 1))

    # sparse voxel coords: 40 unique cells per batch, inside the camera frustum
    xs, ys, zs = jnp.meshgrid(jnp.arange(2, 7), jnp.arange(2, 7), jnp.arange(1, 4),
                              indexing="ij")
    all_cells = jnp.stack([xs.ravel(), ys.ravel(), zs.ravel()], axis=-1).astype(jnp.int32)
    coords_list = []
    for b, kk in enumerate([k_perm0, k_perm1]):
        sel = jax.random.permutation(kk, all_cells.shape[0])[:40]
        cells = all_cells[sel]
        coords_list.append(jnp.concatenate(
            [jnp.full((cells.shape[0], 1), b, jnp.int32), cells], axis=-1))
    coords = jnp.concatenate(coords_list, axis=0)   # (80, 4) [batch, x, y, z]

    proj = Project2DFeaturesTPU(width=W, height=H, voxel_size=voxel_size, config=None)
    projected_features, mapping_num = proj(
        encoded_2d_features, coords, view_matrix, intrinsic_params)
    jax.block_until_ready((projected_features, mapping_num))

    # ---- reference check (same marching algorithm in numpy) ----
    coords_np = np.asarray(coords)
    view_np = np.asarray(view_matrix).copy()
    for b in range(B):
        msk = coords_np[:, 0] == b
        sh = coords_np[msk, 1:].min(axis=0)
        view_np[b, :, :3, 3] -= sh
    org_w, dir_w, _ = Project2DFeaturesTPU.make_rays(
        jnp.asarray(view_np), intrinsic_params, B, V, H, W)
    pf_ref, cnt_ref = _reference_project(
        org_w, dir_w, coords_np, np.asarray(encoded_2d_features),
        proj.depth_min, proj._step_vox, proj.num_steps())

    cnt_k = np.asarray(mapping_num).astype(np.int64)
    cnt_diff = np.abs(cnt_k - cnt_ref)
    assert int(cnt_k.sum()) > 0
    assert int(cnt_diff.sum()) <= 4, f"count mismatch total={int(cnt_diff.sum())}"
    ok = cnt_diff == 0
    assert float(ok.mean()) > 0.9
    pf_k = np.asarray(projected_features, dtype=np.float64)
    rel = np.abs(pf_k[ok] - pf_ref[ok]) / np.maximum(np.abs(pf_ref[ok]), 0.5)
    assert float(rel.max()) < 3e-2, f"feature mismatch rel={float(rel.max())}"

    assert projected_features.shape == (coords.shape[0], C)
    assert mapping_num.shape == (coords.shape[0],)
    assert bool(jnp.all(jnp.isfinite(projected_features)))
    assert bool(jnp.all(mapping_num >= 0))
    print("KERNEL_OK")
</pallas_src>

<mosaic_0001>
module attributes {stable_mosaic.version = 11 : i64} {
  func.func @_ray_march_kernel(%arg0: i32, %arg1: i32, %arg2: memref<8xi32, #tpu.memory_space<smem>>, %arg3: memref<8x512xf32, #tpu.memory_space<vmem>>, %arg4: memref<128x1xi32, #tpu.memory_space<vmem>>, %arg5: memref<1x512xi32, #tpu.memory_space<vmem>>, %arg6: memref<1x512xi32, #tpu.memory_space<vmem>>) attributes {dimension_semantics = [#tpu.dimension_semantics<parallel>, #tpu.dimension_semantics<arbitrary>], iteration_bounds = array<i64: 1, 1>, scalar_prefetch = 1 : i64, scratch_operands = 1 : i64, tpu.core_type = #tpu.core_type<tc>, window_params = [{transform_indices = @transform_0, window_bounds = array<i64: 8, 512>}, {transform_indices = @transform_1, window_bounds = array<i64: 128, 1>}, {transform_indices = @transform_2, window_bounds = array<i64: 1, 512>}]} {
    %c0_i32 = arith.constant 0 : i32
    %0 = arith.cmpi eq, %arg1, %c0_i32 : i32
    %1 = arith.extui %0 : i1 to i32
    %c0_i32_0 = arith.constant 0 : i32
    %2 = arith.cmpi ne, %1, %c0_i32_0 : i32
    scf.if %2 {
      %c-1_i32 = arith.constant -1 : i32
      %36 = vector.broadcast %c-1_i32 : i32 to vector<1x512xi32>
      %c0_16 = arith.constant 0 : index
      %c0_17 = arith.constant 0 : index
      %37 = vector.load %arg5[%c0_16, %c0_17] : memref<1x512xi32, #tpu.memory_space<vmem>>, vector<1x512xi32>
      tpu.vector_store %arg5[%c0_16, %c0_17], %36 {strides = array<i32>} : memref<1x512xi32, #tpu.memory_space<vmem>>, vector<1x512xi32>,
      %c8_i32_18 = arith.constant 8 : i32
      %38 = vector.broadcast %c8_i32_18 : i32 to vector<1x512xi32>
      %c0_19 = arith.constant 0 : index
      %c0_20 = arith.constant 0 : index
      %39 = vector.load %arg6[%c0_19, %c0_20] : memref<1x512xi32, #tpu.memory_space<vmem>>, vector<1x512xi32>
      tpu.vector_store %arg6[%c0_19, %c0_20], %38 {strides = array<i32>} : memref<1x512xi32, #tpu.memory_space<vmem>>, vector<1x512xi32>,
    } else {
    }
    %c0 = arith.constant 0 : index
    %c0_1 = arith.constant 0 : index
    %3 = vector.load %arg3[%c0, %c0_1] : memref<8x512xf32, #tpu.memory_space<vmem>>, vector<8x512xf32>
    %4 = vector.extract_strided_slice %3 {offsets = [0, 0], sizes = [1, 512], strides = [1, 1]} : vector<8x512xf32> to vector<1x512xf32>
    %5 = vector.extract_strided_slice %3 {offsets = [1, 0], sizes = [1, 512], strides = [1, 1]} : vector<8x512xf32> to vector<1x512xf32>
    %6 = vector.extract_strided_slice %3 {offsets = [2, 0], sizes = [1, 512], strides = [1, 1]} : vector<8x512xf32> to vector<1x512xf32>
    %7 = vector.extract_strided_slice %3 {offsets = [3, 0], sizes = [1, 512], strides = [1, 1]} : vector<8x512xf32> to vector<1x512xf32>
    %8 = vector.extract_strided_slice %3 {offsets = [4, 0], sizes = [1, 512], strides = [1, 1]} : vector<8x512xf32> to vector<1x512xf32>
    %9 = vector.extract_strided_slice %3 {offsets = [5, 0], sizes = [1, 512], strides = [1, 1]} : vector<8x512xf32> to vector<1x512xf32>
    %10 = vector.extract_strided_slice %3 {offsets = [6, 0], sizes = [1, 512], strides = [1, 1]} : vector<8x512xf32> to vector<1x512xf32>
    %11 = arith.fptosi %10 : vector<1x512xf32> to vector<1x512xi32>
    %c0_2 = arith.constant 0 : index
    %12 = memref.load %arg2[%c0_2] : memref<8xi32, #tpu.memory_space<smem>>
    %13 = arith.sitofp %12 : i32 to f32
    %c1 = arith.constant 1 : index
    %14 = memref.load %arg2[%c1] : memref<8xi32, #tpu.memory_space<smem>>
    %15 = arith.sitofp %14 : i32 to f32
    %c2 = arith.constant 2 : index
    %16 = memref.load %arg2[%c2] : memref<8xi32, #tpu.memory_space<smem>>
    %17 = arith.sitofp %16 : i32 to f32
    %c3 = arith.constant 3 : index
    %18 = memref.load %arg2[%c3] : memref<8xi32, #tpu.memory_space<smem>>
    %c4 = arith.constant 4 : index
    %19 = memref.load %arg2[%c4] : memref<8xi32, #tpu.memory_space<smem>>
    %c5 = arith.constant 5 : index
    %20 = memref.load %arg2[%c5] : memref<8xi32, #tpu.memory_space<smem>>
    %21 = vector.broadcast %18 : i32 to vector<1x512xi32>
    %22 = arith.muli %11, %21 : vector<1x512xi32>
    %23 = arith.addi %19, %20 : i32
    %c1_i32 = arith.constant 1 : i32
    %24 = arith.addi %23, %c1_i32 : i32
    %25 = vector.broadcast %24 : i32 to vector<1x512xi32>
    %26 = arith.addi %22, %25 : vector<1x512xi32>
    %c0_3 = arith.constant 0 : index
    %c0_4 = arith.constant 0 : index
    %27 = vector.load %arg4[%c0_3, %c0_4] : memref<128x1xi32, #tpu.memory_space<vmem>>, vector<128x1xi32>
    %28 = vector.shape_cast %27 : vector<128x1xi32> to vector<128x1xi32>
    %29 = vector.broadcast %28 : vector<128x1xi32> to vector<128x512xi32>
    %c0_5 = arith.constant 0 : index
    %c0_6 = arith.constant 0 : index
    %30 = vector.load %arg6[%c0_5, %c0_6] : memref<1x512xi32, #tpu.memory_space<vmem>>, vector<1x512xi32>
    %c0_7 = arith.constant 0 : index
    %c0_8 = arith.constant 0 : index
    %31 = vector.load %arg5[%c0_7, %c0_8] : memref<1x512xi32, #tpu.memory_space<vmem>>, vector<1x512xi32>
    %c0_i32_9 = arith.constant 0 : i32
    %c8_i32 = arith.constant 8 : i32
    %32 = arith.addi %c0_i32_9, %c8_i32 : i32
    %c1_i32_10 = arith.constant 1 : i32
    %33:2 = scf.for %arg7 = %c0_i32_9 to %32 step %c1_i32_10 iter_args(%arg8 = %30, %arg9 = %31) -> (vector<1x512xi32>, vector<1x512xi32>)  : i32 {
      %36 = arith.sitofp %arg7 : i32 to f32
      %cst = arith.constant 5.000000e-01 : f32
      %37 = arith.mulf %36, %cst : f32
      %cst_16 = arith.constant 1.000000e-01 : f32
      %38 = arith.addf %cst_16, %37 : f32
      %39 = vector.broadcast %38 : f32 to vector<1x512xf32>
      %40 = arith.mulf %39, %7 : vector<1x512xf32>
      %41 = arith.addf %4, %40 : vector<1x512xf32>
      %42 = math.floor %41 : vector<1x512xf32>
      %cst_17 = arith.constant -1.000000e+00 : f32
      %43 = vector.broadcast %cst_17 : f32 to vector<1x512xf32>
      %44 = arith.maximumf %43, %42 : vector<1x512xf32>
      %45 = vector.broadcast %13 : f32 to vector<1x512xf32>
      %46 = arith.minimumf %45, %44 : vector<1x512xf32>
      %47 = arith.fptosi %46 : vector<1x512xf32> to vector<1x512xi32>
      %48 = vector.broadcast %38 : f32 to vector<1x512xf32>
      %49 = arith.mulf %48, %8 : vector<1x512xf32>
      %50 = arith.addf %5, %49 : vector<1x512xf32>
      %51 = math.floor %50 : vector<1x512xf32>
      %cst_18 = arith.constant -1.000000e+00 : f32
      %52 = vector.broadcast %cst_18 : f32 to vector<1x512xf32>
      %53 = arith.maximumf %52, %51 : vector<1x512xf32>
      %54 = vector.broadcast %15 : f32 to vector<1x512xf32>
      %55 = arith.minimumf %54, %53 : vector<1x512xf32>
      %56 = arith.fptosi %55 : vector<1x512xf32> to vector<1x512xi32>
      %57 = vector.broadcast %38 : f32 to vector<1x512xf32>
      %58 = arith.mulf %57, %9 : vector<1x512xf32>
      %59 = arith.addf %6, %58 : vector<1x512xf32>
      %60 = math.floor %59 : vector<1x512xf32>
      %cst_19 = arith.constant -1.000000e+00 : f32
      %61 = vector.broadcast %cst_19 : f32 to vector<1x512xf32>
      %62 = arith.maximumf %61, %60 : vector<1x512xf32>
      %63 = vector.broadcast %17 : f32 to vector<1x512xf32>
      %64 = arith.minimumf %63, %62 : vector<1x512xf32>
      %65 = arith.fptosi %64 : vector<1x512xf32> to vector<1x512xi32>
      %66 = vector.broadcast %19 : i32 to vector<1x512xi32>
      %67 = arith.muli %47, %66 : vector<1x512xi32>
      %68 = arith.addi %26, %67 : vector<1x512xi32>
      %69 = vector.broadcast %20 : i32 to vector<1x512xi32>
      %70 = arith.muli %56, %69 : vector<1x512xi32>
      %71 = arith.addi %68, %70 : vector<1x512xi32>
      %72 = arith.addi %71, %65 : vector<1x512xi32>
      %73 = vector.broadcast %72 : vector<1x512xi32> to vector<128x512xi32>
      %74 = arith.cmpi eq, %29, %73 : vector<128x512xi32>
      %75 = arith.extui %74 : vector<128x512xi1> to vector<128x512xi32>
      %cst_20 = arith.constant dense<-2147483648> : vector<512xi32>
      %76 = vector.multi_reduction <maxsi>, %75, %cst_20 [0] : vector<128x512xi32> to vector<512xi32>
      %77 = vector.shape_cast %76 : vector<512xi32> to vector<1x512xi32>
      %c0_i32_21 = arith.constant 0 : i32
      %78 = vector.broadcast %c0_i32_21 : i32 to vector<1x512xi32>
      %79 = arith.cmpi sgt, %77, %78 : vector<1x512xi32>
      %80 = vector.broadcast %arg7 : i32 to vector<1x512xi32>
      %81 = arith.cmpi slt, %80, %arg8 : vector<1x512xi32>
      %82 = arith.andi %79, %81 : vector<1x512xi1>
      %83 = vector.broadcast %arg7 : i32 to vector<1x512xi32>
      %84 = arith.select %82, %83, %arg8 : vector<1x512xi1>, vector<1x512xi32>
      %85 = arith.select %82, %72, %arg9 : vector<1x512xi1>, vector<1x512xi32>
      scf.yield %84, %85 : vector<1x512xi32>, vector<1x512xi32>
    }
    %c8_i32_11 = arith.constant 8 : i32
    %c0_12 = arith.constant 0 : index
    %c0_13 = arith.constant 0 : index
    %34 = vector.load %arg6[%c0_12, %c0_13] : memref<1x512xi32, #tpu.memory_space<vmem>>, vector<1x512xi32>
    tpu.vector_store %arg6[%c0_12, %c0_13], %33#0 {strides = array<i32>} : memref<1x512xi32, #tpu.memory_space<vmem>>, vector<1x512xi32>,
    %c0_14 = arith.constant 0 : index
    %c0_15 = arith.constant 0 : index
    %35 = vector.load %arg5[%c0_14, %c0_15] : memref<1x512xi32, #tpu.memory_space<vmem>>, vector<1x512xi32>
    tpu.vector_store %arg5[%c0_14, %c0_15], %33#1 {strides = array<i32>} : memref<1x512xi32, #tpu.memory_space<vmem>>, vector<1x512xi32>,
    return
  }
  func.func @transform_0(%arg0: i32, %arg1: i32, %arg2: memref<8xi32, #tpu.memory_space<smem>>) -> (i32, i32) {
    %c0_i32 = arith.constant 0 : i32
    %c0_i32_0 = arith.constant 0 : i32
    return %c0_i32, %arg0 : i32, i32
  }
  func.func @transform_1(%arg0: i32, %arg1: i32, %arg2: memref<8xi32, #tpu.memory_space<smem>>) -> (i32, i32) {
    %c0_i32 = arith.constant 0 : i32
    %c0_i32_0 = arith.constant 0 : i32
    return %arg1, %c0_i32 : i32, i32
  }
  func.func @transform_2(%arg0: i32, %arg1: i32, %arg2: memref<8xi32, #tpu.memory_space<smem>>) -> (i32, i32) {
    %c0_i32 = arith.constant 0 : i32
    %c0_i32_0 = arith.constant 0 : i32
    return %c0_i32, %arg0 : i32, i32
  }
}

</mosaic_0001>

<bundles_post_ra>
// kernel: tpu_custom_call.1
= control target key start
LH: loop header
LB: loop body
LE: loop exit
PB: predicated region body
PF: predicated region fallthrough
CT: control target
= control target key end

     0   :  { %s898_s15 = smov [#allocation4]   ;;  %s1864_s0 = inlined_call_operand.vmem [shape: s32[8], index: 0, kind: input, shape index: {}]   ;;  %s1865_s1 = inlined_call_operand.vmem [shape: f32[8,512], index: 1, kind: input, shape index: {}]   ;;  %s1866_s2 = inlined_call_operand.vmem [shape: s32[128,1], index: 2, kind: input, shape index: {}]   ;;  %s1867_s3 = inlined_call_operand.hbm [shape: s32[1,512], index: 3, kind: output, shape index: {}]  }
   0x1   :  { %s9_s14 = sshll.u32 %s1864_s0, 4  ;;  %s10_s14 = int_to_ptr.vmem [resolvable:$true] %s9_s14 }
   0x2   :  { %12 = dma.vmem_to_smem %s10_s14, 16, %s898_s15, [#allocation3] }
   0x3   :  { %858 = dma.done.wait [#allocation3], 16 }
   0x4   :  { %859 = vsyncadd [#allocation3], 4294967280 }
   0x5   :  { %15 = sfence }
   0x6   :  { %v64_v0 = vld [vmem:[%s1866_s2 + $0x20] sm:$0xff]  ;;  %v62_v1 = vld [vmem:[%s1866_s2 + $0x10] sm:$0xff]  ;;  %v899_v3 = vmov 0  }
   0x7   :  { %v60_v2 = vld [vmem:[%s1866_s2] sm:$0xff]  ;;  %785 = vset.pattern.permute.xlu2 %v899_v3  ;;  %784 = vset.pattern.permute.xlu1 %v899_v3 }
   0x8   :  { %783 = vset.pattern.permute.xlu0 %v899_v3  ;;  %89 = vperm.xlu2 %785, %v64_v0  }
   0x9   :  { %83 = vperm.xlu1 %784, %v62_v1   ;;  %77 = vperm.xlu0 %783, %v60_v2  }
   0xa   :  { %16 = vsyncpa [#allocation6], 0  ;;  %v65_v4 = vld [vmem:[%s1866_s2 + $0x28] sm:$0xff]  ;;  %v63_v5 = vld [vmem:[%s1866_s2 + $0x18] sm:$0xff]  ;;  %s957_s8 = sld [smem:[#allocation4]]  ;;  %v25_v20 = vlaneseq  ;;  %v1911_v22 = vmov 0 }
   0xb   :  { %v61_v6 = vld [vmem:[%s1866_s2 + $0x8] sm:$0xff]  ;;  %v68_v7 = vld [vmem:[%s1866_s2 + $0x40] sm:$0xff]  ;;  %v67_v8 = vld [vmem:[%s1866_s2 + $0x38] sm:$0xff]  ;;  %s965_s13 = sld [smem:[#allocation4 + $0x1]]  ;;  %v900_v25 = vmov 4294967295   ;;  %v901_v29 = vmov 8  }
   0xc   :  { %v66_v9 = vld [vmem:[%s1866_s2 + $0x30] sm:$0xff]  ;;  %v71_v10 = vld [vmem:[%s1866_s2 + $0x58] sm:$0xff]  ;;  %v69_v12 = vld [vmem:[%s1866_s2 + $0x48] sm:$0xff]  ;;  %s967_s14 = sld [smem:[#allocation4 + $0x2]]  ;;  %vm998_vm0 = vcmp.lt.s32.totalorder %v25_v20, 512  ;;  %s1089_s10 = smov 0  }
   0xd   :  { %v70_v11 = vld [vmem:[%s1866_s2 + $0x50] sm:$0xff]  ;;  %v73_v14 = vld [vmem:[%s1866_s2 + $0x68] sm:$0xff]  ;;  %v72_v15 = vld [vmem:[%s1866_s2 + $0x60] sm:$0xff]  ;;  %s990_s25 = sld [smem:[#allocation4 + $0x4]]  ;;  %v1912_v22 = vsel %vm998_vm0, 4294967295, %v1911_v22 }
   0xe   :  { %v74_v13 = vld [vmem:[%s1866_s2 + $0x70] sm:$0xff]  ;;  %v75_v16 = vld [vmem:[%s1866_s2 + $0x78] sm:$0xff]  ;;  %s992_s26 = sld [smem:[#allocation4 + $0x5]]  ;;  %1913 = vst [vmem:[#allocation13_spill] sm:$0xff] %v1912_v22  ;;  %v1011_v26 = vld [vmem:[%s1865_s1] sm:$0xff] }
   0xf   :  { %s994_s27 = sld [smem:[#allocation4 + $0x3]]  ;;  %29 = vst.msk [vmem:[#allocation5] sm:$0xf] %vm998_vm0, %v900_v25  ;;  %v1016_v27 = vld [vmem:[%s1865_s1 + $0x8] sm:$0xff]  ;;  %v1021_v28 = vld [vmem:[%s1865_s1 + $0x10] sm:$0xff]  ;;  %v1028_v30 = vld [vmem:[%s1865_s1 + $0x18] sm:$0xff]  ;;  %v626_v31 = vceil.f32 %v1011_v26  ;;  %v627_v32 = vfloor.f32 %v1011_v26 }
  0x10   :  { %92 = vperm.xlu2 %785, %v65_v4   ;;  %s40_s15 = scvt.s32.f32 %s957_s8  ;;  %1916 = vst [vmem:[#allocation16_spill] sm:$0xff] %v1011_v26  ;;  %v631_v33 = vceil.f32 %v1016_v27  ;;  %v632_v34 = vfloor.f32 %v1016_v27  ;;  %vm625_vm1 = vcmp.lt.s32.totalorder %v1011_v26, 0  ;;  %vm630_vm2 = vcmp.lt.s32.totalorder %v1016_v27, 0 }
  0x11   :  { %86 = vperm.xlu1 %784, %v63_v5   ;;  %80 = vperm.xlu0 %783, %v61_v6   ;;  %s42_s16 = scvt.s32.f32 %s965_s13  ;;  %1917 = vst [vmem:[#allocation17_spill] sm:$0xff] %v1016_v27  ;;  %vm635_vm3 = vcmp.lt.s32.totalorder %v1021_v28, 0  ;;  %v636_v35 = vceil.f32 %v1021_v28  ;;  %v628_v36 = vsel %vm625_vm1, %v626_v31, %v627_v32  ;;  %v637_v38 = vfloor.f32 %v1021_v28 }
  0x12   :  { %s44_s19 = scvt.s32.f32 %s967_s14  ;;  %1918 = vst [vmem:[#allocation18_spill] sm:$0xff] %v1021_v28  ;;  %v633_v37 = vsel %vm630_vm2, %v631_v33, %v632_v34  ;;  %vm640_vm4 = vcmp.lt.s32.totalorder %v1028_v30, 0  ;;  %v629_v39 = vcvt.f32.s32 %v628_v36  ;;  %v641_v41 = vceil.f32 %v1028_v30 }
  0x13   :  { %30 = vst.msk [vmem:[#allocation2] sm:$0xf] %vm998_vm0, %v901_v29  ;;  %v634_v40 = vcvt.f32.s32 %v633_v37  ;;  %v642_v42 = vfloor.f32 %v1028_v30  ;;  %v638_v43 = vsel %vm635_vm3, %v636_v35, %v637_v38 }
  0x14   :  { %1919 = vst [vmem:[#allocation19_spill] sm:$0xff] %v1028_v30  ;;  %s53_s9 = sadd.s32 %s992_s26, %s990_s25  ;;  %v639_v45 = vcvt.f32.s32 %v638_v43 }
  0x15   :  { %s54_s1 = sadd.s32 1, %s53_s9  ;;  %v48_v44 = vstv %s994_s27  ;;  %v643_v46 = vsel %vm640_vm4, %v641_v41, %v642_v42 }
  0x16   :  { %v49_v47 = vmul.u32 %v629_v39, %v48_v44  ;;  %v50_v48 = vmul.u32 %v634_v40, %v48_v44  ;;  %v644_v50 = vcvt.f32.s32 %v643_v46  ;;  %v55_v51 = vstv %s54_s1  ;;  %v125_v52 = vld [vmem:[#allocation5] sm:$0xf] }
  0x17   :  { %v51_v55 = vmul.u32 %v639_v45, %v48_v44  ;;  %v130_v59 = vperm.slane %v125_v52, 0   ;;  %v131_v2 = vperm.slane %v125_v52, 1   ;;  %v132_v3 = vperm.slane %v125_v52, 2  }
  0x18   :  { %101 = vperm.xlu2 %785, %v68_v7   ;;  %v1051_v56 = vadd.s32 %v55_v51, %v49_v47  ;;  %v1053_v57 = vadd.s32 %v55_v51, %v50_v48  ;;  %v52_v60 = vmul.u32 %v644_v50, %v48_v44  ;;  %v133_v5 = vperm.slane %v125_v52, 3  }
  0x19   :  { %98 = vperm.xlu1 %784, %v67_v8   ;;  %95 = vperm.xlu0 %783, %v66_v9   ;;  %v1055_v0 = vadd.s32 %v55_v51, %v51_v55 }
  0x1a   :  { %1923 = vst [vmem:[#allocation23_spill] sm:$0xff] %v1051_v56  ;;  %v124_v58 = vld [vmem:[#allocation2] sm:$0xf]  ;;  %v1057_v4 = vadd.s32 %v55_v51, %v52_v60 }
  0x1b   :  { %1924 = vst [vmem:[#allocation24_spill] sm:$0xff] %v1053_v57  ;;  %v126_v61 = vperm.slane %v124_v58, 0   ;;  %v127_v62 = vperm.slane %v124_v58, 1   ;;  %v128_v63 = vperm.slane %v124_v58, 2   ;;  %v129_v1 = vperm.slane %v124_v58, 3  }
  0x1c   :  { %1925 = vst [vmem:[#allocation25_spill] sm:$0xff] %v1055_v0 }
  0x1d   :  { %1926 = vst [vmem:[#allocation26_spill] sm:$0xff] %v1057_v4 }
  0x20   :  { %110 = vperm.xlu2 %785, %v71_v10  }
  0x21   :  { %107 = vperm.xlu1 %784, %v70_v11   ;;  %104 = vperm.xlu0 %783, %v69_v12  }
  0x28   :  { %119 = vperm.xlu2 %785, %v74_v13  }
  0x29   :  { %116 = vperm.xlu1 %784, %v73_v14   ;;  %113 = vperm.xlu0 %783, %v72_v15  }
  0x31   :  { %122 = vperm.xlu0 %783, %v75_v16  }
  0x62   :  { %v984_v17 = vpop.permute.xlu2 %89 }
  0x63   :  { %1907 = vst [vmem:[#allocation9_spill] sm:$0xff] %v984_v17 }
  0x6a   :  { %v986_v18 = vpop.permute.xlu2 %92 }
  0x6b   :  { %1908 = vst [vmem:[#allocation10_spill] sm:$0xff] %v986_v18 }
  0x72   :  { %v988_v19 = vpop.permute.xlu2 %101 }
  0x73   :  { %1909 = vst [vmem:[#allocation11_spill] sm:$0xff] %v988_v19 }
  0x7a   :  { %v996_v21 = vpop.permute.xlu2 %110 }
  0x7b   :  { %1910 = vst [vmem:[#allocation12_spill] sm:$0xff] %v996_v21  ;;  %v1002_v23 = vpop.permute.xlu1 %83  ;;  %v1004_v24 = vpop.permute.xlu0 %77 }
  0x7c   :  { %1914 = vst [vmem:[#allocation14_spill] sm:$0xff] %v1002_v23 }
  0x7d   :  { %1915 = vst [vmem:[#allocation15_spill] sm:$0xff] %v1004_v24 }
  0x82   :  { %v1045_v49 = vpop.permute.xlu2 %119 }
  0x83   :  { %1920 = vst [vmem:[#allocation20_spill] sm:$0xff] %v1045_v49  ;;  %v1047_v53 = vpop.permute.xlu1 %86  ;;  %v1049_v54 = vpop.permute.xlu0 %80 }
  0x84   :  { %1921 = vst [vmem:[#allocation21_spill] sm:$0xff] %v1047_v53 }
  0x85   :  { %1922 = vst [vmem:[#allocation22_spill] sm:$0xff] %v1049_v54 }
  0x8b   :  { %v1059_v6 = vpop.permute.xlu1 %98  ;;  %v1061_v7 = vpop.permute.xlu0 %95 }
  0x8c   :  { %1927 = vst [vmem:[#allocation27_spill] sm:$0xff] %v1059_v6 }
  0x8d   :  { %1928 = vst [vmem:[#allocation28_spill] sm:$0xff] %v1061_v7 }
  0x93   :  { %v1063_v8 = vpop.permute.xlu1 %107  ;;  %v1065_v9 = vpop.permute.xlu0 %104 }
  0x94   :  { %1929 = vst [vmem:[#allocation29_spill] sm:$0xff] %v1063_v8 }
  0x95   :  { %1930 = vst [vmem:[#allocation30_spill] sm:$0xff] %v1065_v9 }
  0x9b   :  { %v1067_v10 = vpop.permute.xlu1 %116  ;;  %v1069_v11 = vpop.permute.xlu0 %113 }
  0x9c   :  { %1931 = vst [vmem:[#allocation31_spill] sm:$0xff] %v1067_v10 }
  0x9d   :  { %1932 = vst [vmem:[#allocation32_spill] sm:$0xff] %v1069_v11 }
  0xa3   :  { %v1071_v12 = vpop.permute.xlu0 %122 }
  0xa4 LB: > { %v1933_v49 = vld [vmem:[#allocation20_spill] sm:$0xff]  ;;  %v1934_v10 = vld [vmem:[#allocation31_spill] sm:$0xff]  ;;  %v1937_v8 = vld [vmem:[#allocation29_spill] sm:$0xff]  ;;  %1952 = vst [vmem:[#allocation33_spill] sm:$0xff] %v864_v5  ;;  %s148_s11 = scvt.s32.f32 %s896_s10  ;;  %v180_v41 = vstv %s40_s15  ;;  %v189_v42 = vstv %s42_s16  ;;  %v198_v47 = vstv %s44_s19  ;;  %v1134_v48 = vstv %s990_s25  ;;  %v864_v5 = vphi %v133_v5, %v2037_v5   ;;  %s896_s10 = sphi %s1089_s10, %s139_s10   ;;  %v892_v61 = vphi %v126_v61, %v2044_v61   ;;  %v888_v62 = vphi %v127_v62, %v2043_v62   ;;  %v884_v63 = vphi %v128_v63, %v2042_v63   ;;  %v880_v1 = vphi %v129_v1, %v2041_v1   ;;  %v876_v59 = vphi %v130_v59, %v2040_v59   ;;  %v872_v2 = vphi %v131_v2, %v2039_v2   ;;  %v868_v3 = vphi %v132_v3, %v2038_v3  }
  0xa5   : > { %v1935_v11 = vld [vmem:[#allocation32_spill] sm:$0xff]  ;;  %v1938_v9 = vld [vmem:[#allocation30_spill] sm:$0xff]  ;;  %v1939_v19 = vld [vmem:[#allocation11_spill] sm:$0xff]  ;;  %1953 = vst [vmem:[#allocation34_spill] sm:$0xff] %v868_v3  ;;  %v1137_v50 = vstv %s992_s26 }
  0xa6   : > { %v1936_v21 = vld [vmem:[#allocation12_spill] sm:$0xff]  ;;  %v1940_v6 = vld [vmem:[#allocation27_spill] sm:$0xff]  ;;  %v1941_v54 = vld [vmem:[#allocation22_spill] sm:$0xff]  ;;  %1954 = vst [vmem:[#allocation35_spill] sm:$0xff] %v872_v2  ;;  %s149_s12 = smul.f32 0.5, %s148_s11 }
  0xa7   : > { %v1942_v53 = vld [vmem:[#allocation21_spill] sm:$0xff]  ;;  %v1943_v30 = vld [vmem:[#allocation19_spill] sm:$0xff]  ;;  %v1944_v7 = vld [vmem:[#allocation28_spill] sm:$0xff]  ;;  %1955 = vst [vmem:[#allocation36_spill] sm:$0xff] %v876_v59 }
  0xa8   : > { %v1945_v24 = vld [vmem:[#allocation15_spill] sm:$0xff]  ;;  %v1946_v23 = vld [vmem:[#allocation14_spill] sm:$0xff]  ;;  %v1948_v17 = vld [vmem:[#allocation9_spill] sm:$0xff]  ;;  %1956 = vst [vmem:[#allocation37_spill] sm:$0xff] %v880_v1  ;;  %s150_s17 = sadd.f32 0.1, %s149_s12 }
  0xa9   : > { %v1947_v18 = vld [vmem:[#allocation10_spill] sm:$0xff]  ;;  %v1950_v27 = vld [vmem:[#allocation17_spill] sm:$0xff]  ;;  %v1951_v26 = vld [vmem:[#allocation16_spill] sm:$0xff]  ;;  %1957 = vst [vmem:[#allocation38_spill] sm:$0xff] %v884_v63 }
  0xaa   : > { %v1949_v28 = vld [vmem:[#allocation18_spill] sm:$0xff]  ;;  %1958 = vst [vmem:[#allocation39_spill] sm:$0xff] %v888_v62  ;;  %v151_v13 = vstv %s150_s17  ;;  %v1960_v56 = vld [vmem:[#allocation23_spill] sm:$0xff]  ;;  %v1961_v57 = vld [vmem:[#allocation24_spill] sm:$0xff] }
  0xab   : > { %1959 = vst [vmem:[#allocation40_spill] sm:$0xff] %v892_v61  ;;  %v152_v14 = vmul.f32 %v151_v13, %v1951_v26  ;;  %v153_v15 = vmul.f32 %v151_v13, %v1950_v27  ;;  %v154_v16 = vmul.f32 %v151_v13, %v1949_v28  ;;  %v155_v20 = vmul.f32 %v151_v13, %v1943_v30  ;;  %v1962_v0 = vld [vmem:[#allocation25_spill] sm:$0xff]  ;;  %v1963_v4 = vld [vmem:[#allocation26_spill] sm:$0xff] }
  0xad   : > { %v160_v25 = vrot.slane %v152_v14, 3  ;;  %v161_v29 = vrot.slane %v153_v15, 3  ;;  %v162_v31 = vrot.slane %v154_v16, 3  ;;  %v163_v32 = vrot.slane %v155_v20, 3 }
  0xaf   : > { %v168_v33 = vadd.f32 %v160_v25, %v1951_v26  ;;  %v169_v34 = vadd.f32 %v161_v29, %v1950_v27  ;;  %v170_v35 = vadd.f32 %v162_v31, %v1949_v28  ;;  %v171_v36 = vadd.f32 %v163_v32, %v1943_v30 }
  0xb1   : > { %v172_v37 = vfloor.f32 %v168_v33  ;;  %v173_v38 = vfloor.f32 %v169_v34  ;;  %v174_v39 = vfloor.f32 %v170_v35  ;;  %v175_v40 = vfloor.f32 %v171_v36 }
  0xb3   : > { %v176_v43 = vmax.f32 %v172_v37, -1.0  ;;  %v177_v44 = vmax.f32 %v173_v38, -1.0  ;;  %v178_v45 = vmax.f32 %v174_v39, -1.0  ;;  %v179_v46 = vmax.f32 %v175_v40, -1.0 }
  0xb5   : > { %v181_v51 = vmin.f32 %v180_v41, %v176_v43  ;;  %v182_v52 = vmin.f32 %v180_v41, %v177_v44  ;;  %v183_v55 = vmin.f32 %v180_v41, %v178_v45  ;;  %v184_v58 = vmin.f32 %v180_v41, %v179_v46 }
  0xb6   : > { %v190_v60 = vmin.f32 %v189_v42, %v176_v43  ;;  %v191_v13 = vmin.f32 %v189_v42, %v177_v44  ;;  %v192_v14 = vmin.f32 %v189_v42, %v178_v45  ;;  %v193_v15 = vmin.f32 %v189_v42, %v179_v46 }
  0xb7   : > { %vm645_vm5 = vcmp.lt.s32.totalorder %v181_v51, 0  ;;  %v646_v16 = vceil.f32 %v181_v51  ;;  %v647_v20 = vfloor.f32 %v181_v51  ;;  %vm650_vm6 = vcmp.lt.s32.totalorder %v182_v52, 0 }
  0xb8   : > { %v651_v25 = vceil.f32 %v182_v52  ;;  %v652_v29 = vfloor.f32 %v182_v52  ;;  %vm655_vm7 = vcmp.lt.s32.totalorder %v183_v55, 0  ;;  %v656_v31 = vceil.f32 %v183_v55 }
  0xb9   : > { %v648_v32 = vsel %vm645_vm5, %v646_v16, %v647_v20  ;;  %v657_v33 = vfloor.f32 %v183_v55  ;;  %vm660_vm8 = vcmp.lt.s32.totalorder %v184_v58, 0  ;;  %v661_v34 = vceil.f32 %v184_v58 }
  0xba   : > { %v649_v35 = vcvt.f32.s32 %v648_v32  ;;  %v653_v36 = vsel %vm650_vm6, %v651_v25, %v652_v29  ;;  %v662_v37 = vfloor.f32 %v184_v58  ;;  %vm665_vm9 = vcmp.lt.s32.totalorder %v190_v60, 0 }
  0xbb   : > { %v654_v38 = vcvt.f32.s32 %v653_v36  ;;  %v658_v39 = vsel %vm655_vm7, %v656_v31, %v657_v33  ;;  %v666_v40 = vceil.f32 %v190_v60  ;;  %v667_v41 = vfloor.f32 %v190_v60 }
  0xbc   : > { %v659_v42 = vcvt.f32.s32 %v658_v39  ;;  %v663_v26 = vsel %vm660_vm8, %v661_v34, %v662_v37  ;;  %vm670_vm10 = vcmp.lt.s32.totalorder %v191_v13, 0  ;;  %v671_v51 = vceil.f32 %v191_v13 }
  0xbd   : > { %v664_v27 = vcvt.f32.s32 %v663_v26  ;;  %v668_v52 = vsel %vm665_vm9, %v666_v40, %v667_v41  ;;  %v672_v28 = vfloor.f32 %v191_v13  ;;  %vm675_vm11 = vcmp.lt.s32.totalorder %v192_v14, 0 }
  0xbe   : > { %v669_v16 = vcvt.f32.s32 %v668_v52  ;;  %v676_v55 = vceil.f32 %v192_v14  ;;  %v677_v20 = vfloor.f32 %v192_v14  ;;  %vm680_vm12 = vcmp.lt.s32.totalorder %v193_v15, 0 }
  0xbf   : > { %v673_v32 = vsel %vm670_vm10, %v671_v51, %v672_v28  ;;  %v681_v25 = vceil.f32 %v193_v15  ;;  %v682_v58 = vfloor.f32 %v193_v15  ;;  %v199_v29 = vmin.f32 %v198_v47, %v176_v43 }
  0xc0   : > { %v674_v36 = vcvt.f32.s32 %v673_v32  ;;  %v678_v31 = vsel %vm675_vm11, %v676_v55, %v677_v20  ;;  %v200_v33 = vmin.f32 %v198_v47, %v177_v44  ;;  %v201_v60 = vmin.f32 %v198_v47, %v178_v45 }
  0xc1   : > { %v679_v39 = vcvt.f32.s32 %v678_v31  ;;  %v683_v34 = vsel %vm680_vm12, %v681_v25, %v682_v58  ;;  %v202_v37 = vmin.f32 %v198_v47, %v179_v46  ;;  %vm685_vm13 = vcmp.lt.s32.totalorder %v199_v29, 0 }
  0xc2   : > { %v684_v26 = vcvt.f32.s32 %v683_v34  ;;  %v686_v40 = vceil.f32 %v199_v29  ;;  %v687_v13 = vfloor.f32 %v199_v29  ;;  %vm690_vm14 = vcmp.lt.s32.totalorder %v200_v33, 0 }
  0xc3   : > { %v691_v41 = vceil.f32 %v200_v33  ;;  %v692_v52 = vfloor.f32 %v200_v33  ;;  %vm695_vm15 = vcmp.lt.s32.totalorder %v201_v60, 0  ;;  %v696_v14 = vceil.f32 %v201_v60 }
  0xc4   : > { %v688_v28 = vsel %vm685_vm13, %v686_v40, %v687_v13  ;;  %v697_v51 = vfloor.f32 %v201_v60  ;;  %vm700_vm1 = vcmp.lt.s32.totalorder %v202_v37, 0  ;;  %v701_v43 = vceil.f32 %v202_v37 }
  0xc5   : > { %v689_v15 = vcvt.f32.s32 %v688_v28  ;;  %v693_v55 = vsel %vm690_vm14, %v691_v41, %v692_v52  ;;  %v702_v44 = vfloor.f32 %v202_v37  ;;  %v208_v45 = vmul.u32 %v649_v35, %v1134_v48 }
  0xc6   : > { %v694_v20 = vcvt.f32.s32 %v693_v55  ;;  %v698_v46 = vsel %vm695_vm15, %v696_v14, %v697_v51  ;;  %v209_v47 = vmul.u32 %v654_v38, %v1134_v48  ;;  %v210_v32 = vmul.u32 %v659_v42, %v1134_v48 }
  0xc7   : > { %v699_v25 = vcvt.f32.s32 %v698_v46  ;;  %v703_v58 = vsel %vm700_vm1, %v701_v43, %v702_v44  ;;  %v211_v29 = vmul.u32 %v664_v27, %v1134_v48  ;;  %v212_v31 = vrot.slane %v208_v45, 2 }
  0xc8   : > { %v704_v33 = vcvt.f32.s32 %v703_v58  ;;  %v213_v60 = vrot.slane %v209_v47, 2  ;;  %v214_v34 = vrot.slane %v210_v32, 2  ;;  %v221_v40 = vmul.u32 %v669_v16, %v1137_v50 }
  0xc9   : > { %v215_v13 = vrot.slane %v211_v29, 2  ;;  %v216_v37 = vadd.s32 %v212_v31, %v1960_v56  ;;  %v222_v35 = vmul.u32 %v674_v36, %v1137_v50  ;;  %v223_v41 = vmul.u32 %v679_v39, %v1137_v50 }
  0xca   : > { %v217_v38 = vadd.s32 %v213_v60, %v1961_v57  ;;  %v218_v42 = vadd.s32 %v214_v34, %v1962_v0  ;;  %v224_v52 = vmul.u32 %v684_v26, %v1137_v50  ;;  %v225_v27 = vrot.slane %v221_v40, 3 }
  0xcb   : > { %v219_v48 = vadd.s32 %v215_v13, %v1963_v4  ;;  %v226_v14 = vrot.slane %v222_v35, 3  ;;  %v227_v28 = vrot.slane %v223_v41, 3  ;;  %v233_v51 = vrot.slane %v689_v15, 4 }
  0xcc   : > { %v228_v16 = vrot.slane %v224_v52, 3  ;;  %v229_v43 = vadd.s32 %v225_v27, %v216_v37  ;;  %v234_v55 = vrot.slane %v694_v20, 4  ;;  %v235_v44 = vrot.slane %v699_v25, 4 }
  0xcd   : > { %v230_v45 = vadd.s32 %v226_v14, %v217_v38  ;;  %v231_v36 = vadd.s32 %v227_v28, %v218_v42  ;;  %v236_v46 = vrot.slane %v704_v33, 4  ;;  %v902_v29 = vmov 0  }
  0xce   : > { %v232_v39 = vadd.s32 %v228_v16, %v219_v48  ;;  %v1151_v47 = vadd.s32 %v233_v51, %v229_v43 }
  0xcf   : > { %v1153_v32 = vadd.s32 %v234_v55, %v230_v45  ;;  %v1155_v58 = vadd.s32 %v235_v44, %v231_v36 }
  0xd0   : > { %1964 = vst [vmem:[#allocation41_spill] sm:$0xff] %v1151_v47  ;;  %v1157_v50 = vadd.s32 %v236_v46, %v232_v39  ;;  %v1160_v26 = vperm.slane %v1151_v47, 6 }
  0xd1   : > { %1965 = vst [vmem:[#allocation42_spill] sm:$0xff] %v1153_v32  ;;  %v1163_v15 = vperm.slane %v1153_v32, 6  ;;  %v1166_v20 = vperm.slane %v1155_v58, 6 }
  0xd2   : > { %1966 = vst [vmem:[#allocation43_spill] sm:$0xff] %v1155_v58  ;;  %v1169_v25 = vperm.slane %v1157_v50, 6  ;;  %vm245_vm2 = vcmp.eq.s32.totalorder %v1945_v24, %v1160_v26  ;;  %vm249_vm5 = vcmp.eq.s32.totalorder %v1941_v54, %v1160_v26  ;;  %vm285_vm14 = vcmp.eq.s32.totalorder %v1937_v8, %v1160_v26 }
  0xd3   : > { %1967 = vst [vmem:[#allocation44_spill] sm:$0xff] %v1157_v50  ;;  %vm246_vm3 = vcmp.eq.s32.totalorder %v1945_v24, %v1163_v15  ;;  %vm247_vm4 = vcmp.eq.s32.totalorder %v1945_v24, %v1166_v20  ;;  %vm250_vm6 = vcmp.eq.s32.totalorder %v1941_v54, %v1163_v15  ;;  %vm251_vm7 = vcmp.eq.s32.totalorder %v1941_v54, %v1166_v20 }
  0xd4   : > { %vm248_vm8 = vcmp.eq.s32.totalorder %v1945_v24, %v1169_v25  ;;  %vm252_vm9 = vcmp.eq.s32.totalorder %v1941_v54, %v1169_v25  ;;  %vm286_vm15 = vcmp.eq.s32.totalorder %v1937_v8, %v1163_v15  ;;  %vm287_vm1 = vcmp.eq.s32.totalorder %v1937_v8, %v1166_v20 }
  0xd5   : > { %vm288_vm10 = vcmp.eq.s32.totalorder %v1937_v8, %v1169_v25  ;;  %v1269_v31 = vsel %vm245_vm2, 1, %v902_v29  ;;  %v1275_v33 = vsel %vm246_vm3, 1, %v902_v29  ;;  %v1281_v60 = vsel %vm247_vm4, 1, %v902_v29 }
  0xd6   : > { %vm292_vm13 = vcmp.eq.s32.totalorder %v1936_v21, %v1169_v25  ;;  %vm293_vm12 = vcmp.eq.s32.totalorder %v1935_v11, %v1160_v26  ;;  %vm294_vm2 = vcmp.eq.s32.totalorder %v1935_v11, %v1163_v15  ;;  %vm295_vm11 = vcmp.eq.s32.totalorder %v1935_v11, %v1166_v20 }
  0xd7   : > { %v1295_v34 = vsel %vm248_vm8, 1, %v902_v29  ;;  %v1301_v40 = vsel %vm249_vm5, 1, %v902_v29  ;;  %v1307_v13 = vsel %vm250_vm6, 1, %v902_v29  ;;  %v1313_v37 = vsel %vm251_vm7, 1, %v902_v29 }
  0xd8   : > { %vm296_vm3 = vcmp.eq.s32.totalorder %v1935_v11, %v1169_v25  ;;  %v1327_v35 = vsel %vm252_vm9, 1, %v902_v29  ;;  %vm1968_vm6 = vcmp.eq.s32.totalorder %v1946_v23, %v1160_v26  ;;  %vm1969_vm7 = vcmp.eq.s32.totalorder %v1946_v23, %v1163_v15 }
  0xd9   : > { %v1333_v41 = vsel %vm1968_vm6, 1, %v902_v29  ;;  %v1339_v38 = vsel %vm1969_vm7, 1, %v902_v29  ;;  %vm1970_vm8 = vcmp.eq.s32.totalorder %v1946_v23, %v1166_v20  ;;  %vm1971_vm7 = vcmp.eq.s32.totalorder %v1946_v23, %v1169_v25 }
  0xda   : > { %v1345_v42 = vsel %vm1970_vm8, 1, %v902_v29  ;;  %v1359_v52 = vsel %vm1971_vm7, 1, %v902_v29  ;;  %vm1972_vm8 = vcmp.eq.s32.totalorder %v1942_v53, %v1160_v26  ;;  %vm1973_vm5 = vcmp.eq.s32.totalorder %v1942_v53, %v1163_v15 }
  0xdb   : > { %v1365_v27 = vsel %vm1972_vm8, 1, %v902_v29  ;;  %v1371_v48 = vsel %vm1973_vm5, 1, %v902_v29  ;;  %vm1974_vm4 = vcmp.eq.s32.totalorder %v1942_v53, %v1166_v20  ;;  %vm304_vm7 = vcmp.eq.s32.totalorder %v1933_v49, %v1169_v25 }
  0xdc   : > { %v1377_v14 = vsel %vm1974_vm4, 1, %v902_v29  ;;  %vm306_vm8 = vcmp.eq.s32.totalorder %v1071_v12, %v1163_v15  ;;  %vm1975_vm5 = vcmp.eq.s32.totalorder %v1942_v53, %v1169_v25  ;;  %vm1976_vm4 = vcmp.eq.s32.totalorder %v1948_v17, %v1160_v26 }
  0xdd   : > { %v1391_v28 = vsel %vm1975_vm5, 1, %v902_v29  ;;  %v1397_v51 = vsel %vm1976_vm4, 1, %v902_v29  ;;  %vm1977_vm6 = vcmp.eq.s32.totalorder %v1948_v17, %v1163_v15  ;;  %vm1978_vm9 = vcmp.eq.s32.totalorder %v1948_v17, %v1166_v20 }
  0xde   : > { %v1403_v16 = vsel %vm1977_vm6, 1, %v902_v29  ;;  %v1409_v43 = vsel %vm1978_vm9, 1, %v902_v29  ;;  %vm1979_vm4 = vcmp.eq.s32.totalorder %v1948_v17, %v1169_v25  ;;  %vm1980_vm6 = vcmp.eq.s32.totalorder %v1947_v18, %v1160_v26 }
  0xdf   : > { %v1417_v55 = vsel %vm1979_vm4, 1, %v902_v29  ;;  %v1423_v44 = vsel %vm1980_vm6, 1, %v902_v29  ;;  %vm1981_vm9 = vcmp.eq.s32.totalorder %v1947_v18, %v1163_v15  ;;  %vm1982_vm5 = vcmp.eq.s32.totalorder %v1947_v18, %v1166_v20 }
  0xe0   : > { %v1429_v45 = vsel %vm1981_vm9, 1, %v902_v29  ;;  %v1435_v36 = vsel %vm1982_vm5, 1, %v902_v29  ;;  %vm1983_vm4 = vcmp.eq.s32.totalorder %v1947_v18, %v1169_v25  ;;  %vm1984_vm6 = vcmp.eq.s32.totalorder %v1944_v7, %v1160_v26 }
  0xe1   : > { %v1441_v46 = vsel %vm1983_vm4, 1, %v902_v29  ;;  %v1447_v39 = vsel %vm1984_vm6, 1, %v902_v29  ;;  %vm1985_vm9 = vcmp.eq.s32.totalorder %v1944_v7, %v1163_v15  ;;  %vm1986_vm5 = vcmp.eq.s32.totalorder %v1944_v7, %v1166_v20 }
  0xe2   : > { %v1453_v0 = vsel %vm1985_vm9, 1, %v902_v29  ;;  %v1459_v4 = vsel %vm1986_vm5, 1, %v902_v29  ;;  %vm1987_vm4 = vcmp.eq.s32.totalorder %v1944_v7, %v1169_v25  ;;  %vm1988_vm6 = vcmp.eq.s32.totalorder %v1940_v6, %v1160_v26 }
  0xe3   : > { %v1465_v17 = vsel %vm1987_vm4, 1, %v902_v29  ;;  %v1471_v18 = vsel %vm1988_vm6, 1, %v902_v29  ;;  %vm1989_vm9 = vcmp.eq.s32.totalorder %v1940_v6, %v1163_v15  ;;  %vm1990_vm5 = vcmp.eq.s32.totalorder %v1940_v6, %v1166_v20 }
  0xe4   : > { %v1477_v23 = vsel %vm1989_vm9, 1, %v902_v29  ;;  %v1483_v24 = vsel %vm1990_vm5, 1, %v902_v29  ;;  %vm1991_vm4 = vcmp.eq.s32.totalorder %v1940_v6, %v1169_v25  ;;  %vm1992_vm6 = vcmp.eq.s32.totalorder %v1939_v19, %v1160_v26 }
  0xe5   : > { %v1489_v7 = vsel %vm1991_vm4, 1, %v902_v29  ;;  %v1495_v30 = vsel %vm1992_vm6, 1, %v902_v29  ;;  %vm1993_vm9 = vcmp.eq.s32.totalorder %v1939_v19, %v1163_v15  ;;  %vm1994_vm5 = vcmp.eq.s32.totalorder %v1939_v19, %v1166_v20 }
  0xe6   : > { %v1501_v53 = vsel %vm1993_vm9, 1, %v902_v29  ;;  %v1507_v54 = vsel %vm1994_vm5, 1, %v902_v29  ;;  %vm1995_vm4 = vcmp.eq.s32.totalorder %v1939_v19, %v1169_v25  ;;  %vm1996_vm6 = vcmp.eq.s32.totalorder %v1938_v9, %v1160_v26 }
  0xe7   : > { %v1513_v6 = vsel %vm1995_vm4, 1, %v902_v29  ;;  %v1519_v56 = vsel %vm1996_vm6, 1, %v902_v29  ;;  %vm1997_vm9 = vcmp.eq.s32.totalorder %v1938_v9, %v1163_v15  ;;  %vm1998_vm5 = vcmp.eq.s32.totalorder %v1938_v9, %v1166_v20 }
  0xe8   : > { %v1525_v57 = vsel %vm1997_vm9, 1, %v902_v29  ;;  %v1531_v22 = vsel %vm1998_vm5, 1, %v902_v29  ;;  %vm1999_vm4 = vcmp.eq.s32.totalorder %v1938_v9, %v1169_v25  ;;  %v1543_v5 = vsel %vm285_vm14, 1, %v902_v29 }
  0xe9   : > { %v1537_v19 = vsel %vm1999_vm4, 1, %v902_v29  ;;  %v1549_v3 = vsel %vm286_vm15, 1, %v902_v29  ;;  %v1555_v2 = vsel %vm287_vm1, 1, %v902_v29  ;;  %v1561_v9 = vsel %vm288_vm10, 1, %v902_v29 }
  0xea   : > { %vm2000_vm14 = vcmp.eq.s32.totalorder %v1936_v21, %v1160_v26  ;;  %vm2001_vm15 = vcmp.eq.s32.totalorder %v1936_v21, %v1163_v15  ;;  %vm2002_vm1 = vcmp.eq.s32.totalorder %v1936_v21, %v1166_v20  ;;  %v1585_v8 = vsel %vm292_vm13, 1, %v902_v29 }
  0xeb   : > { %v1567_v59 = vsel %vm2000_vm14, 1, %v902_v29  ;;  %v1573_v50 = vsel %vm2001_vm15, 1, %v902_v29  ;;  %v1579_v1 = vsel %vm2002_vm1, 1, %v902_v29  ;;  %v1591_v58 = vsel %vm293_vm12, 1, %v902_v29 }
  0xec   : > { %v1597_v63 = vsel %vm294_vm2, 1, %v902_v29  ;;  %v1603_v62 = vsel %vm295_vm11, 1, %v902_v29  ;;  %v1609_v21 = vsel %vm296_vm3, 1, %v902_v29  ;;  %vm2003_vm10 = vcmp.eq.s32.totalorder %v1934_v10, %v1160_v26 }
  0xed   : > { %v1615_v61 = vsel %vm2003_vm10, 1, %v902_v29  ;;  %vm2005_vm12 = vcmp.eq.s32.totalorder %v1934_v10, %v1163_v15  ;;  %vm2007_vm11 = vcmp.eq.s32.totalorder %v1934_v10, %v1166_v20  ;;  %vm2009_vm13 = vcmp.eq.s32.totalorder %v1934_v10, %v1169_v25 }
  0xee   : > { %2004 = vst [vmem:[#allocation45_spill] sm:$0xff] %v1615_v61  ;;  %v1621_v32 = vsel %vm2005_vm12, 1, %v902_v29  ;;  %v1627_v47 = vsel %vm2007_vm11, 1, %v902_v29  ;;  %v1633_v11 = vsel %vm2009_vm13, 1, %v902_v29  ;;  %vm2010_vm2 = vcmp.eq.s32.totalorder %v1933_v49, %v1160_v26 }
  0xef   : > { %2006 = vst [vmem:[#allocation46_spill] sm:$0xff] %v1621_v32  ;;  %v1639_v61 = vsel %vm2010_vm2, 1, %v902_v29  ;;  %vm2012_vm3 = vcmp.eq.s32.totalorder %v1933_v49, %v1163_v15  ;;  %vm2014_vm6 = vcmp.eq.s32.totalorder %v1933_v49, %v1166_v20  ;;  %v1657_v10 = vsel %vm304_vm7, 1, %v902_v29 }
  0xf0   : > { %2008 = vst [vmem:[#allocation47_spill] sm:$0xff] %v1627_v47  ;;  %v1645_v32 = vsel %vm2012_vm3, 1, %v902_v29  ;;  %v1651_v47 = vsel %vm2014_vm6, 1, %v902_v29  ;;  %vm2016_vm9 = vcmp.eq.s32.totalorder %v1071_v12, %v1160_v26  ;;  %vm2017_vm5 = vcmp.eq.s32.totalorder %v1071_v12, %v1166_v20 }
  0xf1   : > { %2011 = vst [vmem:[#allocation48_spill] sm:$0xff] %v1639_v61  ;;  %v1663_v61 = vsel %vm2016_vm9, 1, %v902_v29  ;;  %vm2018_vm7 = vcmp.eq.s32.totalorder %v1071_v12, %v1169_v25  ;;  %vm373_vm4 = vcmp.gt.s32.totalorder %v1269_v31, %v1301_v40  ;;  %vm412_vm14 = vcmp.gt.s32.totalorder %v1275_v33, %v1307_v13 }
  0xf2   : > { %2013 = vst [vmem:[#allocation49_spill] sm:$0xff] %v1645_v32  ;;  %v1669_v32 = vsel %vm306_vm8, 1, %v902_v29  ;;  %v1681_v49 = vsel %vm2018_vm7, 1, %v902_v29  ;;  %vm451_vm8 = vcmp.gt.s32.totalorder %v1281_v60, %v1313_v37  ;;  %v374_v26 = vsel %vm373_vm4, %v1269_v31, %v1301_v40 }
  0xf3   : > { %2015 = vst [vmem:[#allocation50_spill] sm:$0xff] %v1651_v47  ;;  %v1675_v47 = vsel %vm2017_vm5, 1, %v902_v29  ;;  %v413_v15 = vsel %vm412_vm14, %v1275_v33, %v1307_v13  ;;  %v452_v20 = vsel %vm451_vm8, %v1281_v60, %v1313_v37  ;;  %vm490_vm15 = vcmp.gt.s32.totalorder %v1295_v34, %v1327_v35 }
  0xf4   : > { %vm375_vm1 = vcmp.gt.s32.totalorder %v374_v26, %v1333_v41  ;;  %vm414_vm10 = vcmp.gt.s32.totalorder %v413_v15, %v1339_v38  ;;  %vm453_vm12 = vcmp.gt.s32.totalorder %v452_v20, %v1345_v42  ;;  %v491_v25 = vsel %vm490_vm15, %v1295_v34, %v1327_v35 }
  0xf5   : > { %v376_v29 = vsel %vm375_vm1, %v374_v26, %v1333_v41  ;;  %v415_v31 = vsel %vm414_vm10, %v413_v15, %v1339_v38  ;;  %v454_v33 = vsel %vm453_vm12, %v452_v20, %v1345_v42  ;;  %vm492_vm11 = vcmp.gt.s32.totalorder %v491_v25, %v1359_v52 }
  0xf6   : > { %vm377_vm13 = vcmp.gt.s32.totalorder %v376_v29, %v1365_v27  ;;  %vm416_vm2 = vcmp.gt.s32.totalorder %v415_v31, %v1371_v48  ;;  %vm455_vm3 = vcmp.gt.s32.totalorder %v454_v33, %v1377_v14  ;;  %v493_v60 = vsel %vm492_vm11, %v491_v25, %v1359_v52 }
  0xf7   : > { %v378_v40 = vsel %vm377_vm13, %v376_v29, %v1365_v27  ;;  %v417_v34 = vsel %vm416_vm2, %v415_v31, %v1371_v48  ;;  %v456_v13 = vsel %vm455_vm3, %v454_v33, %v1377_v14  ;;  %vm494_vm6 = vcmp.gt.s32.totalorder %v493_v60, %v1391_v28 }
  0xf8   : > { %vm379_vm9 = vcmp.gt.s32.totalorder %v378_v40, %v1397_v51  ;;  %vm418_vm5 = vcmp.gt.s32.totalorder %v417_v34, %v1403_v16  ;;  %vm457_vm7 = vcmp.gt.s32.totalorder %v456_v13, %v1409_v43  ;;  %v495_v37 = vsel %vm494_vm6, %v493_v60, %v1391_v28 }
  0xf9   : > { %v380_v35 = vsel %vm379_vm9, %v378_v40, %v1397_v51  ;;  %v419_v41 = vsel %vm418_vm5, %v417_v34, %v1403_v16  ;;  %v458_v38 = vsel %vm457_vm7, %v456_v13, %v1409_v43  ;;  %vm496_vm4 = vcmp.gt.s32.totalorder %v495_v37, %v1417_v55 }
  0xfa   : > { %vm381_vm14 = vcmp.gt.s32.totalorder %v380_v35, %v1423_v44  ;;  %vm420_vm8 = vcmp.gt.s32.totalorder %v419_v41, %v1429_v45  ;;  %vm459_vm15 = vcmp.gt.s32.totalorder %v458_v38, %v1435_v36  ;;  %v497_v42 = vsel %vm496_vm4, %v495_v37, %v1417_v55  ;;  %v2024_v26 = vld [vmem:[#allocation50_spill] sm:$0xff] }
  0xfb   : > { %v382_v52 = vsel %vm381_vm14, %v380_v35, %v1423_v44  ;;  %v421_v27 = vsel %vm420_vm8, %v419_v41, %v1429_v45  ;;  %v460_v48 = vsel %vm459_vm15, %v458_v38, %v1435_v36  ;;  %vm498_vm1 = vcmp.gt.s32.totalorder %v497_v42, %v1441_v46  ;;  %v2021_v36 = vld [vmem:[#allocation47_spill] sm:$0xff] }
  0xfc   : > { %vm383_vm10 = vcmp.gt.s32.totalorder %v382_v52, %v1447_v39  ;;  %vm422_vm12 = vcmp.gt.s32.totalorder %v421_v27, %v1453_v0  ;;  %vm461_vm11 = vcmp.gt.s32.totalorder %v460_v48, %v1459_v4  ;;  %v499_v14 = vsel %vm498_vm1, %v497_v42, %v1441_v46 }
  0xfd   : > { %v384_v28 = vsel %vm383_vm10, %v382_v52, %v1447_v39  ;;  %v423_v51 = vsel %vm422_vm12, %v421_v27, %v1453_v0  ;;  %v462_v16 = vsel %vm461_vm11, %v460_v48, %v1459_v4  ;;  %vm500_vm13 = vcmp.gt.s32.totalorder %v499_v14, %v1465_v17  ;;  %v2025_v27 = vld [vmem:[#allocation41_spill] sm:$0xff] }
  0xfe   : > { %vm385_vm2 = vcmp.gt.s32.totalorder %v384_v28, %v1471_v18  ;;  %vm424_vm3 = vcmp.gt.s32.totalorder %v423_v51, %v1477_v23  ;;  %vm463_vm6 = vcmp.gt.s32.totalorder %v462_v16, %v1483_v24  ;;  %v501_v43 = vsel %vm500_vm13, %v499_v14, %v1465_v17 }
  0xff   : > { %v386_v55 = vsel %vm385_vm2, %v384_v28, %v1471_v18  ;;  %v425_v44 = vsel %vm424_vm3, %v423_v51, %v1477_v23  ;;  %v464_v45 = vsel %vm463_vm6, %v462_v16, %v1483_v24  ;;  %vm502_vm9 = vcmp.gt.s32.totalorder %v501_v43, %v1489_v7 }
 0x100   : > { %vm387_vm5 = vcmp.gt.s32.totalorder %v386_v55, %v1495_v30  ;;  %vm426_vm7 = vcmp.gt.s32.totalorder %v425_v44, %v1501_v53  ;;  %vm465_vm4 = vcmp.gt.s32.totalorder %v464_v45, %v1507_v54  ;;  %v503_v0 = vsel %vm502_vm9, %v501_v43, %v1489_v7 }
 0x101   : > { %v388_v4 = vsel %vm387_vm5, %v386_v55, %v1495_v30  ;;  %v427_v17 = vsel %vm426_vm7, %v425_v44, %v1501_v53  ;;  %v466_v18 = vsel %vm465_vm4, %v464_v45, %v1507_v54  ;;  %vm504_vm14 = vcmp.gt.s32.totalorder %v503_v0, %v1513_v6 }
 0x102   : > { %vm389_vm8 = vcmp.gt.s32.totalorder %v388_v4, %v1519_v56  ;;  %vm428_vm15 = vcmp.gt.s32.totalorder %v427_v17, %v1525_v57  ;;  %vm467_vm1 = vcmp.gt.s32.totalorder %v466_v18, %v1531_v22  ;;  %v505_v23 = vsel %vm504_vm14, %v503_v0, %v1513_v6 }
 0x103   : > { %v390_v24 = vsel %vm389_vm8, %v388_v4, %v1519_v56  ;;  %v429_v7 = vsel %vm428_vm15, %v427_v17, %v1525_v57  ;;  %v468_v30 = vsel %vm467_vm1, %v466_v18, %v1531_v22  ;;  %vm506_vm10 = vcmp.gt.s32.totalorder %v505_v23, %v1537_v19  ;;  %v2027_v4 = vld [vmem:[#allocation40_spill] sm:$0xff]  ;;  %v2028_v17 = vld [vmem:[#allocation39_spill] sm:$0xff]  ;;  %v2029_v18 = vld [vmem:[#allocation38_spill] sm:$0xff] }
 0x104   : > { %vm391_vm12 = vcmp.gt.s32.totalorder %v390_v24, %v1543_v5  ;;  %vm430_vm11 = vcmp.gt.s32.totalorder %v429_v7, %v1549_v3  ;;  %vm469_vm13 = vcmp.gt.s32.totalorder %v468_v30, %v1555_v2  ;;  %v507_v53 = vsel %vm506_vm10, %v505_v23, %v1537_v19  ;;  %v2030_v23 = vld [vmem:[#allocation43_spill] sm:$0xff] }
 0x105   : > { %v392_v54 = vsel %vm391_vm12, %v390_v24, %v1543_v5  ;;  %v431_v6 = vsel %vm430_vm11, %v429_v7, %v1549_v3  ;;  %v470_v56 = vsel %vm469_vm13, %v468_v30, %v1555_v2  ;;  %vm508_vm2 = vcmp.gt.s32.totalorder %v507_v53, %v1561_v9 }
 0x106   : > { %vm393_vm3 = vcmp.gt.s32.totalorder %v392_v54, %v1567_v59  ;;  %vm432_vm6 = vcmp.gt.s32.totalorder %v431_v6, %v1573_v50  ;;  %vm471_vm9 = vcmp.gt.s32.totalorder %v470_v56, %v1579_v1  ;;  %v509_v22 = vsel %vm508_vm2, %v507_v53, %v1561_v9 }
 0x107   : > { %v394_v57 = vsel %vm393_vm3, %v392_v54, %v1567_v59  ;;  %v433_v19 = vsel %vm432_vm6, %v431_v6, %v1573_v50  ;;  %v472_v5 = vsel %vm471_vm9, %v470_v56, %v1579_v1  ;;  %vm510_vm5 = vcmp.gt.s32.totalorder %v509_v22, %v1585_v8  ;;  %v2019_v50 = vld [vmem:[#allocation45_spill] sm:$0xff]  ;;  %v2020_v1 = vld [vmem:[#allocation46_spill] sm:$0xff]  ;;  %v2032_v56 = vld [vmem:[#allocation44_spill] sm:$0xff] }
 0x108   : > { %vm395_vm7 = vcmp.gt.s32.totalorder %v394_v57, %v1591_v58  ;;  %vm434_vm4 = vcmp.gt.s32.totalorder %v433_v19, %v1597_v63  ;;  %vm473_vm14 = vcmp.gt.s32.totalorder %v472_v5, %v1603_v62  ;;  %v511_v2 = vsel %vm510_vm5, %v509_v22, %v1585_v8  ;;  %v2031_v6 = vld [vmem:[#allocation37_spill] sm:$0xff] }
 0x109   : > { %v396_v3 = vsel %vm395_vm7, %v394_v57, %v1591_v58  ;;  %v435_v9 = vsel %vm434_vm4, %v433_v19, %v1597_v63  ;;  %v474_v59 = vsel %vm473_vm14, %v472_v5, %v1603_v62  ;;  %vm512_vm8 = vcmp.gt.s32.totalorder %v511_v2, %v1609_v21  ;;  %v2022_v63 = vld [vmem:[#allocation48_spill] sm:$0xff]  ;;  %v2023_v62 = vld [vmem:[#allocation49_spill] sm:$0xff]  ;;  %v2034_v5 = vld [vmem:[#allocation35_spill] sm:$0xff] }
 0x10a   : > { %vm397_vm15 = vcmp.gt.s32.totalorder %v396_v3, %v2019_v50  ;;  %vm436_vm1 = vcmp.gt.s32.totalorder %v435_v9, %v2020_v1  ;;  %vm475_vm10 = vcmp.gt.s32.totalorder %v474_v59, %v2021_v36  ;;  %v513_v46 = vsel %vm512_vm8, %v511_v2, %v1609_v21  ;;  %v2033_v19 = vld [vmem:[#allocation36_spill] sm:$0xff]  ;;  %v2035_v2 = vld [vmem:[#allocation34_spill] sm:$0xff] }
 0x10b   : > { %v398_v39 = vsel %vm397_vm15, %v396_v3, %v2019_v50  ;;  %v437_v8 = vsel %vm436_vm1, %v435_v9, %v2020_v1  ;;  %v476_v58 = vsel %vm475_vm10, %v474_v59, %v2021_v36  ;;  %vm514_vm12 = vcmp.gt.s32.totalorder %v513_v46, %v1633_v11  ;;  %v2036_v3 = vld [vmem:[#allocation33_spill] sm:$0xff] }
 0x10c   : > { %vm399_vm11 = vcmp.gt.s32.totalorder %v398_v39, %v2022_v63  ;;  %vm438_vm13 = vcmp.gt.s32.totalorder %v437_v8, %v2023_v62  ;;  %vm477_vm2 = vcmp.gt.s32.totalorder %v476_v58, %v2024_v26  ;;  %v515_v15 = vsel %vm514_vm12, %v513_v46, %v1633_v11 }
 0x10d   : > { %v400_v20 = vsel %vm399_vm11, %v398_v39, %v2022_v63  ;;  %v439_v21 = vsel %vm438_vm13, %v437_v8, %v2023_v62  ;;  %v478_v25 = vsel %vm477_vm2, %v476_v58, %v2024_v26  ;;  %vm516_vm3 = vcmp.gt.s32.totalorder %v515_v15, %v1657_v10 }
 0x10e   : > { %vm401_vm6 = vcmp.gt.s32.totalorder %v400_v20, %v1663_v61  ;;  %vm440_vm9 = vcmp.gt.s32.totalorder %v439_v21, %v1669_v32  ;;  %vm479_vm5 = vcmp.gt.s32.totalorder %v478_v25, %v1675_v47  ;;  %v517_v29 = vsel %vm516_vm3, %v515_v15, %v1657_v10 }
 0x10f   : > { %v402_v31 = vsel %vm401_vm6, %v400_v20, %v1663_v61  ;;  %v441_v11 = vsel %vm440_vm9, %v439_v21, %v1669_v32  ;;  %v480_v33 = vsel %vm479_vm5, %v478_v25, %v1675_v47  ;;  %vm518_vm7 = vcmp.gt.s32.totalorder %v517_v29, %v1681_v49 }
 0x110   : > { %v403_v60 = vrot.slane %v402_v31, 4  ;;  %v442_v40 = vrot.slane %v441_v11, 4  ;;  %v481_v34 = vrot.slane %v480_v33, 4  ;;  %v519_v13 = vsel %vm518_vm7, %v517_v29, %v1681_v49  ;;  %v2026_v49 = vld [vmem:[#allocation42_spill] sm:$0xff] }
 0x111   : > { %v520_v37 = vrot.slane %v519_v13, 4  ;;  %v533_v52 = vstv %s896_s10  ;;  %v546_v48 = vrot.slane %v2025_v27, 6  ;;  %v547_v14 = vrot.slane %v2026_v49, 6  ;;  %s139_s10 = sadd.s32 1, %s896_s10  }
 0x112   : > { %vm404_vm4 = vcmp.gt.s32.totalorder %v402_v31, %v403_v60  ;;  %vm443_vm14 = vcmp.gt.s32.totalorder %v441_v11, %v442_v40  ;;  %vm482_vm8 = vcmp.gt.s32.totalorder %v480_v33, %v481_v34  ;;  %vm534_vm13 = vcmp.lt.s32.totalorder %v533_v52, %v2027_v4  ;;  %p136_p0 = scmp.ge.s32.totalorder %s139_s10, 8  }
 0x113   : > { %v405_v35 = vsel %vm404_vm4, %v402_v31, %v403_v60  ;;  %v444_v10 = vsel %vm443_vm14, %v441_v11, %v442_v40  ;;  %v483_v41 = vsel %vm482_vm8, %v480_v33, %v481_v34  ;;  %vm521_vm15 = vcmp.gt.s32.totalorder %v519_v13, %v520_v37  ;;  %s582_s21 = sshll.u32 (%p136_p0), %s1867_s3, 4  ;;  %s903_s0 = smov (%p136_p0), [#allocation5]   ;;  %s583_s21 = int_to_ptr.hbm [resolvable:$true] %s582_s21 }
 0x114   : > { %v406_v61 = vrot.slane %v405_v35, 2  ;;  %v445_v32 = vrot.slane %v444_v10, 2  ;;  %v484_v38 = vrot.slane %v483_v41, 2  ;;  %v522_v47 = vsel %vm521_vm15, %v519_v13, %v520_v37  ;;  %s580_s22 = sshll.u32 (%p136_p0), %s903_s0, 4  ;;  %s581_s22 = int_to_ptr.vmem [resolvable:$true] %s580_s22 }
 0x115   : > { %v523_v42 = vrot.slane %v522_v47, 2  ;;  %vm535_vm2 = vcmp.lt.s32.totalorder %v533_v52, %v2028_v17  ;;  %vm536_vm3 = vcmp.lt.s32.totalorder %v533_v52, %v2029_v18  ;;  %v548_v24 = vrot.slane %v2030_v23, 6 }
 0x116   : > { %vm407_vm1 = vcmp.gt.s32.totalorder %v405_v35, %v406_v61  ;;  %vm446_vm10 = vcmp.gt.s32.totalorder %v444_v10, %v445_v32  ;;  %vm485_vm12 = vcmp.gt.s32.totalorder %v483_v41, %v484_v38  ;;  %v549_v22 = vrot.slane %v2032_v56, 6 }
 0x117   : > { %v408_v28 = vsel %vm407_vm1, %v405_v35, %v406_v61  ;;  %v447_v51 = vsel %vm446_vm10, %v444_v10, %v445_v32  ;;  %v486_v16 = vsel %vm485_vm12, %v483_v41, %v484_v38  ;;  %vm524_vm11 = vcmp.gt.s32.totalorder %v522_v47, %v523_v42 }
 0x118   : > { %v409_v43 = vrot.slane %v408_v28, 1  ;;  %v448_v55 = vrot.slane %v447_v51, 1  ;;  %v487_v44 = vrot.slane %v486_v16, 1  ;;  %v525_v45 = vsel %vm524_vm11, %v522_v47, %v523_v42 }
 0x119   : > { %v526_v0 = vrot.slane %v525_v45, 1  ;;  %vm537_vm1 = vcmp.lt.s32.totalorder %v533_v52, %v2031_v6 }
 0x11a   : > { %vm410_vm6 = vcmp.gt.s32.totalorder %v408_v28, %v409_v43  ;;  %vm449_vm9 = vcmp.gt.s32.totalorder %v447_v51, %v448_v55  ;;  %vm488_vm5 = vcmp.gt.s32.totalorder %v486_v16, %v487_v44 }
 0x11b   : > { %v411_v7 = vsel %vm410_vm6, %v408_v28, %v409_v43  ;;  %v450_v30 = vsel %vm449_vm9, %v447_v51, %v448_v55  ;;  %v489_v53 = vsel %vm488_vm5, %v486_v16, %v487_v44  ;;  %vm527_vm7 = vcmp.gt.s32.totalorder %v525_v45, %v526_v0 }
 0x11c   : > { %v528_v54 = vsel %vm527_vm7, %v525_v45, %v526_v0  ;;  %vm529_vm4 = vcmp.gt.s32.totalorder %v411_v7, 0  ;;  %vm530_vm14 = vcmp.gt.s32.totalorder %v450_v30, 0  ;;  %vm531_vm8 = vcmp.gt.s32.totalorder %v489_v53, 0 }
 0x11d   : > { %vm532_vm15 = vcmp.gt.s32.totalorder %v528_v54, 0  ;;  %vm538_vm10 = vmand %vm529_vm4, %vm534_vm13  ;;  %vm557_vm13 = vcmask (%p136_p0), 1040384  }
 0x11e   : > { %vm539_vm12 = vmand %vm530_vm14, %vm535_vm2  ;;  %v542_v57 = vsel %vm538_vm10, %v533_v52, %v2027_v4   ;;  %v550_v9 = vsel %vm538_vm10, %v546_v48, %v2033_v19   ;;  %138 = sbr.rel (!%p136_p0) target bundleno = 164 (0xa4), region = 39  ;;  %vm559_vm2 = vcmask (%p136_p0), 1042434  }
 0x11f   : > { %vm540_vm11 = vmand %vm531_vm8, %vm536_vm3  ;;  %v543_v50 = vsel %vm539_vm12, %v533_v52, %v2028_v17   ;;  %v551_v36 = vsel %vm539_vm12, %v547_v14, %v2034_v5   ;;  %v2040_v59 = vmov %v550_v9  ;;  %v2044_v61 = vmov %v542_v57 }
 0x120   : > { %vm541_vm6 = vmand %vm532_vm15, %vm537_vm1  ;;  %v544_v46 = vsel %vm540_vm11, %v533_v52, %v2029_v18   ;;  %v552_v39 = vsel %vm540_vm11, %v548_v24, %v2035_v2   ;;  %v2039_v2 = vmov %v551_v36  ;;  %v2043_v62 = vmov %v543_v50 }
 0x121   : > { %v545_v8 = vsel %vm541_vm6, %v533_v52, %v2031_v6   ;;  %v553_v58 = vsel %vm541_vm6, %v549_v22, %v2036_v3   ;;  %v2038_v3 = vmov %v552_v39  ;;  %v2042_v63 = vmov %v544_v46 }
 0x122   : > { %v2037_v5 = vmov %v553_v58  ;;  %v2041_v1 = vmov %v545_v8  ;;  %vm561_vm3 = vcmask (%p136_p0), 1041408   ;;  %v568_v26 = vrot.slane (%p136_p0), %v551_v36, 7 }
 0x123   :  { %v569_v15 = vrot.slane %v552_v39, 6  ;;  %v570_v20 = vrot.slane %v553_v58, 5  ;;  %v554_v21 = vrot.slane %v543_v50, 7  ;;  %v555_v25 = vrot.slane %v544_v46, 6 }
 0x124   :  { %v571_v29 = vsel %vm557_vm13, %v550_v9, %v568_v26  ;;  %v556_v31 = vrot.slane %v545_v8, 5 }
 0x125   :  { %v572_v11 = vsel %vm559_vm2, %v569_v15, %v570_v20  ;;  %v558_v33 = vsel %vm557_vm13, %v542_v57, %v554_v21 }
 0x126   :  { %v573_v12 = vsel %vm561_vm3, %v571_v29, %v572_v11  ;;  %v560_v59 = vsel %vm559_vm2, %v555_v25, %v556_v31 }
 0x127   :  { %574 = vst.msk [vmem:[#allocation5] sm:$0xf] %vm998_vm0, %v573_v12  ;;  %v562_v63 = vsel %vm561_vm3, %v558_v33, %v560_v59 }
 0x128   :  { %567 = vst.msk [vmem:[#allocation2] sm:$0xf] %vm998_vm0, %v562_v63  ;;  %585 = dma.vmem_to_hbm [thread:$0]  %s581_s22, 64, %s583_s21, [#allocation6]  }
 0x129   :  { %860 = dma.done.wait [#allocation6], 64  }
 0x12a   :  { %861 = vsyncadd [#allocation6], 4294967232 }
 0x12b   :  { %590 = vsyncpa [#allocation6], 1 }

</bundles_post_ra>
